<compile_context>
chip_gen: v6e
topology: v6e:2x2x1
jax: 0.10.0
libtpu: 0.0.40
codegen_flags: <defaults>
</compile_context>

<pallas_src>
import jax
import jax.numpy as jnp
from jax.experimental import pallas as pl
from jax.experimental.pallas import tpu as pltpu  # noqa: F401  (TPU namespace available)


def detect_forward(xs):
    """Optimal (zero-copy) Detect.forward: returns (xs[1], xs[0])."""
    assert len(xs) >= 2, "Detect.forward expects a list with at least 2 tensors"
    return xs[1], xs[0]


def _detect_identity_kernel(x0_ref, x1_ref, y0_ref, y1_ref):
    """No-op body.

    Output 0 is aliased to input 1 (y0 <- x1) and output 1 to input 0
    (y1 <- x0), so the swap is pure buffer bookkeeping: zero bytes moved,
    zero vector/MXU/DMA work inside the kernel.
    """
    # Intentionally empty: aliased outputs already hold the correct data.


def detect_forward_pallas(xs):
    """Standalone Pallas-kernel realization of Detect.forward.

    Metadata-only via input/output aliasing; all refs stay in HBM
    (memory_space=pl.ANY), so VMEM limits (incl. v7x's 64 MiB) are irrelevant.
    """
    assert len(xs) >= 2, "Detect.forward expects a list with at least 2 tensors"
    x0, x1 = xs[0], xs[1]

    out_shapes = (
        jax.ShapeDtypeStruct(x1.shape, x1.dtype),  # y0 = x1
        jax.ShapeDtypeStruct(x0.shape, x0.dtype),  # y1 = x0
    )

    y0, y1 = pl.pallas_call(
        _detect_identity_kernel,
        out_shape=out_shapes,
        in_specs=[
            pl.BlockSpec(memory_space=pl.ANY),
            pl.BlockSpec(memory_space=pl.ANY),
        ],
        out_specs=(
            pl.BlockSpec(memory_space=pl.ANY),
            pl.BlockSpec(memory_space=pl.ANY),
        ),
        # input 1 (x1) backs output 0 (y0); input 0 (x0) backs output 1 (y1).
        input_output_aliases={1: 0, 0: 1},
        # Advertise to the XLA scheduler that this custom call is free
        # (no flops, no bytes) so it never acts as a scheduling barrier.
        cost_estimate=pl.CostEstimate(flops=0, transcendentals=0, bytes_accessed=0),
    )(x0, x1)

    return y0, y1


if __name__ == "__main__":
    key = jax.random.PRNGKey(0)
    k0, k1 = jax.random.split(key, 2)

    # Small NCHW feature maps, consistent with a detection-head input list.
    x0 = jax.random.normal(k0, (2, 4, 16, 16), dtype=jnp.float32)
    x1 = jax.random.normal(k1, (2, 8, 8, 8), dtype=jnp.float32)
    xs = [x0, x1]

    # Optimal path: pure zero-copy swap (what a fused model should use).
    r0, r1 = detect_forward(xs)

    # Standalone Pallas kernel path (aliased, metadata-only).
    y0, y1 = detect_forward_pallas(xs)
    y0 = jax.block_until_ready(y0)
    y1 = jax.block_until_ready(y1)

    # Reference: Detect.forward returns (x[1], x[0]).
    assert y0.shape == x1.shape and y0.dtype == x1.dtype, (y0.shape, x1.shape)
    assert y1.shape == x0.shape and y1.dtype == x0.dtype, (y1.shape, x0.shape)
    assert jnp.array_equal(y0, x1), "y0 mismatch vs x[1]"
    assert jnp.array_equal(y1, x0), "y1 mismatch vs x[0]"
    assert jnp.array_equal(r0, x1) and jnp.array_equal(r1, x0), "pure-JAX swap mismatch"

    print("KERNEL_OK")
</pallas_src>

<mosaic_0001>
module attributes {stable_mosaic.version = 11 : i64} {
  func.func @_detect_identity_kernel(%arg0: memref<2x4x16x16xf32, #tpu.memory_space<any>>, %arg1: memref<2x8x8x8xf32, #tpu.memory_space<any>>, %arg2: memref<2x8x8x8xf32, #tpu.memory_space<any>>, %arg3: memref<2x4x16x16xf32, #tpu.memory_space<any>>) attributes {dimension_semantics = [], scalar_prefetch = 0 : i64, scratch_operands = 0 : i64, tpu.core_type = #tpu.core_type<tc>} {
    return
  }
}

</mosaic_0001>

<bundles_post_ra>
// kernel: tpu_custom_call.1
= control target key start
LH: loop header
LB: loop body
LE: loop exit
PB: predicated region body
PF: predicated region fallthrough
CT: control target
= control target key end

     0   :  { %s29_s0 = inlined_call_operand.hbm [shape: f32[2,4,16,16], index: 0, kind: input, shape index: {}, may-alias: {0,3}]   ;;  %s30_s1 = inlined_call_operand.hbm [shape: f32[2,8,8,8], index: 1, kind: input, shape index: {}, may-alias: {1,2}]   ;;  %s31_s2 = inlined_call_operand.hbm [shape: f32[2,8,8,8], index: 2, kind: output, shape index: {0}, may-alias: {1,2}]   ;;  %s32_s3 = inlined_call_operand.hbm [shape: f32[2,4,16,16], index: 3, kind: output, shape index: {1}, may-alias: {0,3}]  }

</bundles_post_ra>
